<compile_context>
chip_gen: v6e
topology: v6e:2x2x1
jax: 0.10.0
libtpu: 0.0.40
codegen_flags: <defaults>
</compile_context>

<pallas_src>
import jax
import jax.numpy as jnp
from jax.experimental import pallas as pl
from jax.experimental.pallas import tpu as pltpu

# Module hyperparameters (synthetic, deterministic)
GAME_OBSERVATION = 8   # game_observation
GAME_ACTIONS = 4       # game_actions
HIDDEN = 128

_MAX_TILE_B_DEFAULT = 16384   # default tile cap (review: >=16K to amortize step overhead)
_HARD_TILE_B_CAP = 32768      # v7x VMEM (64 MiB/TC) safety cap
_VMEM_LIMIT_BYTES = 48 * 1024 * 1024


def mlp_kernel(x_ref, w1t_ref, b1_ref, w2t_ref, b2_ref, o_ref):
    """Fused 2-layer MLP on one batch tile, feature-major layout.

    x_ref  : [GAME_OBSERVATION, TILE_B]  bf16   (streamed per grid step)
    w1t_ref: [HIDDEN, GAME_OBSERVATION]  bf16   (VMEM-resident)
    b1_ref : [HIDDEN, 1]                 f32    (VMEM-resident)
    w2t_ref: [GAME_ACTIONS, HIDDEN]      bf16   (VMEM-resident)
    b2_ref : [GAME_ACTIONS, 1]           f32    (VMEM-resident)
    o_ref  : [GAME_ACTIONS, TILE_B]      f32    (lane-dense output tile)
    """
    # Hoisted bias loads (once per tile).
    b1 = b1_ref[...]                                  # [HIDDEN, 1]  f32
    b2 = b2_ref[...]                                  # [ACTIONS, 1] f32

    # Layer 1: bf16 MXU matmul with f32 accumulation. Bias + ReLU + bf16
    # downcast fused into one expression so only the bf16 copy of the
    # [HIDDEN, TILE_B] hidden activation is materialized in VMEM
    # (f32 VPU math keeps this correct/efficient on v5e too).
    h = jnp.maximum(
        jnp.dot(w1t_ref[...], x_ref[...],
                preferred_element_type=jnp.float32) + b1,
        0.0).astype(jnp.bfloat16)                     # [HIDDEN, TILE_B] bf16

    # Layer 2: bf16 MXU matmul, f32 accumulation, bias in f32.
    y = jnp.dot(w2t_ref[...], h,
                preferred_element_type=jnp.float32) + b2   # [ACTIONS, TILE_B] f32

    # Lane-dense store (last dim = TILE_B); tanh on EUP in f32.
    o_ref[...] = jnp.tanh(y).astype(o_ref.dtype)


def _round_up(n, m):
    return ((n + m - 1) // m) * m


def _choose_tile_b(b, max_tile_b):
    """Big tiles (amortize ~0.35 us/step overhead) but >=2 grid steps when
    possible so ('parallel',) can use both v7x TensorCores."""
    t = _round_up(pl.cdiv(b, 2), 256)
    return max(256, min(max_tile_b, _HARD_TILE_B_CAP, t))


def prepare_params(w1, b1, w2, b2):
    """One-time parameter relayout — call once, outside the per-step hot path.

    w1: [GAME_OBSERVATION, HIDDEN], b1: [HIDDEN],
    w2: [HIDDEN, GAME_ACTIONS],     b2: [GAME_ACTIONS]
    """
    w1t = jnp.asarray(w1).T.astype(jnp.bfloat16)            # [HIDDEN, OBS]
    w2t = jnp.asarray(w2).T.astype(jnp.bfloat16)            # [ACTIONS, HIDDEN]
    b1c = jnp.asarray(b1).reshape(HIDDEN, 1).astype(jnp.float32)
    b2c = jnp.asarray(b2).reshape(GAME_ACTIONS, 1).astype(jnp.float32)
    return w1t, b1c, w2t, b2c


def game_ai_forward_t(x_t, w1t, b1c, w2t, b2c, *, tile_b=None,
                      max_tile_b=_MAX_TILE_B_DEFAULT):
    """Fast path: feature-major in, feature-major out.

    x_t: [GAME_OBSERVATION, B] bf16  ->  [GAME_ACTIONS, B] f32
    (consumers that accept feature-major output skip the final transpose).
    """
    obs, B = x_t.shape
    assert obs == GAME_OBSERVATION
    if tile_b is None:
        tile_b = _choose_tile_b(B, max_tile_b)
    assert tile_b % 256 == 0, "tile_b must be a multiple of 256"
    assert tile_b <= _HARD_TILE_B_CAP, "tile_b capped at 32768 for v7x VMEM"

    grid_b = pl.cdiv(B, tile_b)
    b_pad = grid_b * tile_b
    if b_pad != B:
        x_t = jnp.pad(x_t, ((0, 0), (0, b_pad - B)))

    flops = 2 * b_pad * (GAME_OBSERVATION * HIDDEN + HIDDEN * GAME_ACTIONS)
    bytes_accessed = (x_t.size * 2 + w1t.size * 2 + w2t.size * 2
                      + b1c.size * 4 + b2c.size * 4
                      + GAME_ACTIONS * b_pad * 4)

    out_t = pl.pallas_call(
        mlp_kernel,
        out_shape=jax.ShapeDtypeStruct((GAME_ACTIONS, b_pad), jnp.float32),
        grid=(grid_b,),
        in_specs=[
            # x: streamed, default depth-2 double buffering.
            pl.BlockSpec((GAME_OBSERVATION, tile_b), lambda i: (0, i)),
            # Weights / biases: VMEM-resident (same block every step).
            pl.BlockSpec((HIDDEN, GAME_OBSERVATION), lambda i: (0, 0)),
            pl.BlockSpec((HIDDEN, 1), lambda i: (0, 0)),
            pl.BlockSpec((GAME_ACTIONS, HIDDEN), lambda i: (0, 0)),
            pl.BlockSpec((GAME_ACTIONS, 1), lambda i: (0, 0)),
        ],
        out_specs=pl.BlockSpec((GAME_ACTIONS, tile_b), lambda i: (0, i)),
        compiler_params=pltpu.CompilerParams(
            dimension_semantics=("parallel",),        # shard batch tiles across TCs
            vmem_limit_bytes=_VMEM_LIMIT_BYTES),      # allow large tiles
        cost_estimate=pl.CostEstimate(
            flops=flops,
            transcendentals=b_pad * GAME_ACTIONS,
            bytes_accessed=bytes_accessed),
    )(x_t, w1t, b1c, w2t, b2c)

    if b_pad != B:
        # Padded batch columns compute tanh(relu(b1)@W2+b2) != 0 — must slice.
        out_t = out_t[:, :B]
    return out_t


def game_ai_forward(x, w1, b1, w2, b2, *, tile_b=None,
                    max_tile_b=_MAX_TILE_B_DEFAULT):
    """Row-major convenience wrapper matching the PyTorch module:
    x: [B, GAME_OBSERVATION] f32 -> [B, GAME_ACTIONS] f32,
    y = tanh(relu(x @ w1 + b1) @ w2 + b2).

    For repeated calls / large B, prefer keeping x feature-major bf16 and
    pre-transposed params, and call game_ai_forward_t directly.
    """
    x_t = x.astype(jnp.bfloat16).T                         # [OBS, B] bf16
    w1t, b1c, w2t, b2c = prepare_params(w1, b1, w2, b2)
    out_t = game_ai_forward_t(x_t, w1t, b1c, w2t, b2c,
                              tile_b=tile_b, max_tile_b=max_tile_b)
    return out_t.T                                         # [B, ACTIONS]


def init_params(key):
    """Deterministic init mimicking nn.Linear's U(-1/sqrt(fan_in), 1/sqrt(fan_in))."""
    k1, k2, k3, k4 = jax.random.split(key, 4)
    bound1 = 1.0 / (GAME_OBSERVATION ** 0.5)
    bound2 = 1.0 / (HIDDEN ** 0.5)
    # Stored transposed relative to PyTorch ([in, out] instead of [out, in]).
    w1 = jax.random.uniform(k1, (GAME_OBSERVATION, HIDDEN),
                            minval=-bound1, maxval=bound1, dtype=jnp.float32)
    b1 = jax.random.uniform(k2, (HIDDEN,),
                            minval=-bound1, maxval=bound1, dtype=jnp.float32)
    w2 = jax.random.uniform(k3, (HIDDEN, GAME_ACTIONS),
                            minval=-bound2, maxval=bound2, dtype=jnp.float32)
    b2 = jax.random.uniform(k4, (GAME_ACTIONS,),
                            minval=-bound2, maxval=bound2, dtype=jnp.float32)
    return w1, b1, w2, b2


if __name__ == "__main__":
    key = jax.random.PRNGKey(0)
    k_x, k_p = jax.random.split(key)

    B = 2
    x = jax.random.normal(k_x, (B, GAME_OBSERVATION), dtype=jnp.float32)
    w1, b1, w2, b2 = init_params(k_p)

    out = game_ai_forward(x, w1, b1, w2, b2)
    out = jax.block_until_ready(out)

    # Reference in plain f32 JAX (same math as the PyTorch module).
    ref = jnp.tanh(jnp.maximum(x @ w1 + b1, 0.0) @ w2 + b2)
    assert out.shape == (B, GAME_ACTIONS)
    # bf16 matmul operands / bf16 hidden activation + f32 accumulation ->
    # loose-but-meaningful tolerance (tanh output range is ±1).
    assert jnp.allclose(out, ref, atol=1e-2, rtol=1e-2), (out, ref)

    print("KERNEL_OK")
</pallas_src>

<mosaic_0001>
module attributes {stable_mosaic.version = 11 : i64} {
  func.func @mlp_kernel(%arg0: i32, %arg1: memref<8x256xbf16, #tpu.memory_space<vmem>>, %arg2: memref<128x8xbf16, #tpu.memory_space<vmem>>, %arg3: memref<128x1xf32, #tpu.memory_space<vmem>>, %arg4: memref<4x128xbf16, #tpu.memory_space<vmem>>, %arg5: memref<4x1xf32, #tpu.memory_space<vmem>>, %arg6: memref<4x256xf32, #tpu.memory_space<vmem>>) attributes {dimension_semantics = [#tpu.dimension_semantics<parallel>], iteration_bounds = array<i64: 1>, scalar_prefetch = 0 : i64, scratch_operands = 0 : i64, tpu.core_type = #tpu.core_type<tc>, window_params = [{transform_indices = @transform_0, window_bounds = array<i64: 8, 256>}, {pipeline_mode = #tpu.pipeline_mode<synchronous>, transform_indices = @transform_1, window_bounds = array<i64: 128, 8>}, {pipeline_mode = #tpu.pipeline_mode<synchronous>, transform_indices = @transform_2, window_bounds = array<i64: 128, 1>}, {pipeline_mode = #tpu.pipeline_mode<synchronous>, transform_indices = @transform_3, window_bounds = array<i64: 4, 128>}, {pipeline_mode = #tpu.pipeline_mode<synchronous>, transform_indices = @transform_4, window_bounds = array<i64: 4, 1>}, {transform_indices = @transform_5, window_bounds = array<i64: 4, 256>}]} {
    %c0 = arith.constant 0 : index
    %c0_0 = arith.constant 0 : index
    %0 = vector.load %arg3[%c0, %c0_0] : memref<128x1xf32, #tpu.memory_space<vmem>>, vector<128x1xf32>
    %c0_1 = arith.constant 0 : index
    %c0_2 = arith.constant 0 : index
    %1 = vector.load %arg5[%c0_1, %c0_2] : memref<4x1xf32, #tpu.memory_space<vmem>>, vector<4x1xf32>
    %c0_3 = arith.constant 0 : index
    %c0_4 = arith.constant 0 : index
    %2 = vector.load %arg2[%c0_3, %c0_4] : memref<128x8xbf16, #tpu.memory_space<vmem>>, vector<128x8xbf16>
    %c0_5 = arith.constant 0 : index
    %c0_6 = arith.constant 0 : index
    %3 = vector.load %arg1[%c0_5, %c0_6] : memref<8x256xbf16, #tpu.memory_space<vmem>>, vector<8x256xbf16>
    %cst = arith.constant dense<0.000000e+00> : vector<128x256xf32>
    %4 = tpu.matmul %2, %3, %cst {dimension_numbers = #tpu.dot_dimension_numbers<[1], [0], [0], [1], [0, 0, 1, 1], [], []>} : vector<128x8xbf16>, vector<8x256xbf16>, vector<128x256xf32> -> vector<128x256xf32>
    %5 = vector.broadcast %0 : vector<128x1xf32> to vector<128x256xf32>
    %6 = arith.addf %4, %5 : vector<128x256xf32>
    %cst_7 = arith.constant 0.000000e+00 : f32
    %7 = vector.broadcast %cst_7 : f32 to vector<128x256xf32>
    %8 = arith.maximumf %6, %7 : vector<128x256xf32>
    %9 = arith.truncf %8 : vector<128x256xf32> to vector<128x256xbf16>
    %c0_8 = arith.constant 0 : index
    %c0_9 = arith.constant 0 : index
    %10 = vector.load %arg4[%c0_8, %c0_9] : memref<4x128xbf16, #tpu.memory_space<vmem>>, vector<4x128xbf16>
    %cst_10 = arith.constant dense<0.000000e+00> : vector<4x256xf32>
    %11 = tpu.matmul %10, %9, %cst_10 {dimension_numbers = #tpu.dot_dimension_numbers<[1], [0], [0], [1], [0, 0, 1, 1], [], []>} : vector<4x128xbf16>, vector<128x256xbf16>, vector<4x256xf32> -> vector<4x256xf32>
    %12 = vector.broadcast %1 : vector<4x1xf32> to vector<4x256xf32>
    %13 = arith.addf %11, %12 : vector<4x256xf32>
    %14 = math.tanh %13 : vector<4x256xf32>
    %c0_11 = arith.constant 0 : index
    %c0_12 = arith.constant 0 : index
    %15 = vector.load %arg6[%c0_11, %c0_12] : memref<4x256xf32, #tpu.memory_space<vmem>>, vector<4x256xf32>
    tpu.vector_store %arg6[%c0_11, %c0_12], %14 {strides = array<i32>} : memref<4x256xf32, #tpu.memory_space<vmem>>, vector<4x256xf32>,
    return
  }
  func.func @transform_0(%arg0: i32) -> (i32, i32) {
    %c0_i32 = arith.constant 0 : i32
    %c0_i32_0 = arith.constant 0 : i32
    return %c0_i32, %arg0 : i32, i32
  }
  func.func @transform_1(%arg0: i32) -> (i32, i32) {
    %c0_i32 = arith.constant 0 : i32
    %c0_i32_0 = arith.constant 0 : i32
    %c0_i32_1 = arith.constant 0 : i32
    return %c0_i32, %c0_i32_0 : i32, i32
  }
  func.func @transform_2(%arg0: i32) -> (i32, i32) {
    %c0_i32 = arith.constant 0 : i32
    %c0_i32_0 = arith.constant 0 : i32
    %c0_i32_1 = arith.constant 0 : i32
    return %c0_i32, %c0_i32_0 : i32, i32
  }
  func.func @transform_3(%arg0: i32) -> (i32, i32) {
    %c0_i32 = arith.constant 0 : i32
    %c0_i32_0 = arith.constant 0 : i32
    %c0_i32_1 = arith.constant 0 : i32
    return %c0_i32, %c0_i32_0 : i32, i32
  }
  func.func @transform_4(%arg0: i32) -> (i32, i32) {
    %c0_i32 = arith.constant 0 : i32
    %c0_i32_0 = arith.constant 0 : i32
    %c0_i32_1 = arith.constant 0 : i32
    return %c0_i32, %c0_i32_0 : i32, i32
  }
  func.func @transform_5(%arg0: i32) -> (i32, i32) {
    %c0_i32 = arith.constant 0 : i32
    %c0_i32_0 = arith.constant 0 : i32
    return %c0_i32, %arg0 : i32, i32
  }
}

</mosaic_0001>

<bundles_post_ra>
// kernel: tpu_custom_call.1
= control target key start
LH: loop header
LB: loop body
LE: loop exit
PB: predicated region body
PF: predicated region fallthrough
CT: control target
= control target key end

     0   :  { %vm206_vm0 = vcmask 1043456   ;;  %v501_v3 = vmov 0   ;;  %vm181_vm1 = vcmask 64512   ;;  %s711_s0 = inlined_call_operand.vmem [shape: bf16[8,256], index: 0, kind: input, shape index: {}]   ;;  %s712_s1 = inlined_call_operand.vmem [shape: bf16[128,8], index: 1, kind: input, shape index: {}]   ;;  %s713_s2 = inlined_call_operand.vmem [shape: f32[128,1], index: 2, kind: input, shape index: {}]   ;;  %s714_s3 = inlined_call_operand.vmem [shape: bf16[4,128], index: 3, kind: input, shape index: {}]   ;;  %s715_s4 = inlined_call_operand.vmem [shape: f32[4,1], index: 4, kind: input, shape index: {}]   ;;  %s716_s5 = inlined_call_operand.hbm [shape: f32[4,256], index: 5, kind: output, shape index: {}]  }
   0x1   :  { %v55_v0 = vld [vmem:[%s711_s0] sm:$0xff]  ;;  %245 = vmatprep.mubr.bf16.mxu0 %v501_v3  ;;  %463 = vset.pattern.permute.xlu0 %v501_v3  ;;  %v36_v6 = vld [vmem:[%s713_s2 + $0x70] sm:$0xff]  ;;  %v37_v8 = vld [vmem:[%s713_s2 + $0x78] sm:$0xff] }
   0x2   :  { %v451_v1 = vcombine.high %v55_v0, %v55_v0  ;;  %v450_v2 = vcombine.low %v55_v0, %v55_v0  ;;  %464 = vset.pattern.permute.xlu1 %v501_v3  ;;  %412 = vmatprep.mubr.bf16.mxu1 %v501_v3  ;;  %v467_v5 = vld [vmem:[%s712_s1] sm:$0xff]   ;;  %v35_v9 = vld [vmem:[%s713_s2 + $0x68] sm:$0xff]  ;;  %v32_v11 = vld [vmem:[%s713_s2 + $0x50] sm:$0xff] }
   0x3   :  { %128 = vperm.xlu0 %463, %v36_v6   ;;  %v34_v7 = vld [vmem:[%s713_s2 + $0x60] sm:$0xff]  ;;  %v468_v10 = vld [vmem:[%s712_s1 + $0x8] sm:$0xff]   ;;  %v33_v12 = vld [vmem:[%s713_s2 + $0x58] sm:$0xff] }
   0x4   :  { %452 = vmatprep.subr.msk.bf16.mxu0 %vm206_vm0, %v451_v1  ;;  %v208_v4 = vsel %vm206_vm0, %v450_v2, 0  ;;  %118 = vperm.xlu1 %464, %v34_v7  }
   0x5   :  { %228 = vmatpush1.bf16.msra.mxu0 %v208_v4 }
   0x7   :  { %133 = vperm.xlu0 %463, %v37_v8  }
   0x8   :  { %453 = vmatmul.mubr.msk.bf16.vlgmr.msra.gmra.mxu0 %vm181_vm1, %v467_v5  ;;  %123 = vperm.xlu1 %464, %v35_v9  }
   0x9   :  { %255 = vmatprep.mubr.bf16.mxu0 %v501_v3 }
   0xa   :  { %10 = vsyncpa [#allocation3], 0  ;;  %v30_v13 = vld [vmem:[%s713_s2 + $0x40] sm:$0xff]  ;;  %v31_v14 = vld [vmem:[%s713_s2 + $0x48] sm:$0xff]  ;;  %s502_s17 = smov [#allocation2]  }
   0xb   :  { %108 = vperm.xlu0 %463, %v32_v11   ;;  %v469_v15 = vld [vmem:[%s712_s1 + $0x10] sm:$0xff]   ;;  %v29_v17 = vld [vmem:[%s713_s2 + $0x38] sm:$0xff]  ;;  %v26_v18 = vld [vmem:[%s713_s2 + $0x20] sm:$0xff]  ;;  %s434_s18 = sshll.u32 %s502_s17, 4  ;;  %s435_s18 = int_to_ptr.vmem [resolvable:$true] %s434_s18 }
   0xc   :  { %113 = vperm.xlu1 %464, %v33_v12   ;;  %v28_v16 = vld [vmem:[%s713_s2 + $0x30] sm:$0xff]  ;;  %v27_v19 = vld [vmem:[%s713_s2 + $0x28] sm:$0xff]  ;;  %v470_v20 = vld [vmem:[%s712_s1 + $0x18] sm:$0xff]   ;;  %s479_s19 = scalar_lea.vmem %s435_s18, 128  ;;  %p484_p1 = scmp.lt.s32.totalorder %s435_s18, %s435_s18 }
   0xd   :  { %v24_v21 = vld [vmem:[%s713_s2 + $0x10] sm:$0xff]  ;;  %v25_v22 = vld [vmem:[%s713_s2 + $0x18] sm:$0xff]  ;;  %v22_v23 = vld [vmem:[%s713_s2] sm:$0xff]  ;;  %p480_p0 = scmp.ne.s32.totalorder %s435_s18, %s479_s19  ;;  %p485_p2 = scmp.lt.s32.totalorder %s479_s19, %s479_s19 }
   0xe   :  { %v23_v24 = vld [vmem:[%s713_s2 + $0x8] sm:$0xff]  ;;  %v471_v25 = vld [vmem:[%s712_s1 + $0x20] sm:$0xff]   ;;  %v473_v28 = vld [vmem:[%s712_s1 + $0x30] sm:$0xff]  }
   0xf   :  { %98 = vperm.xlu0 %463, %v30_v13   ;;  %v38_v26 = vld [vmem:[%s715_s4] sm:$0xf]  ;;  %v472_v27 = vld [vmem:[%s712_s1 + $0x28] sm:$0xff]   ;;  %v474_v29 = vld [vmem:[%s712_s1 + $0x38] sm:$0xff]   ;;  %p486_p3 = por %p485_p2, %p484_p1 }
  0x10   :  { %454 = vmatmul.mubr.msk.bf16.gmra.mxu0 %vm181_vm1, %v468_v10  ;;  %103 = vperm.xlu1 %464, %v31_v14  }
  0x11   :  { %265 = vmatprep.mubr.bf16.mxu0 %v501_v3  ;;  %p487_p4 = pnand %p486_p3, %p480_p0 }
  0x13   :  { %88 = vperm.xlu0 %463, %v28_v16  }
  0x14   :  { %93 = vperm.xlu1 %464, %v29_v17  }
  0x17   :  { %78 = vperm.xlu0 %463, %v26_v18  }
  0x18   :  { %455 = vmatmul.mubr.msk.bf16.gmra.mxu0 %vm181_vm1, %v469_v15  ;;  %83 = vperm.xlu1 %464, %v27_v19  }
  0x19   :  { %275 = vmatprep.mubr.bf16.mxu0 %v501_v3 }
  0x1b   :  { %68 = vperm.xlu0 %463, %v24_v21  }
  0x1c   :  { %73 = vperm.xlu1 %464, %v25_v22  }
  0x1f   :  { %58 = vperm.xlu0 %463, %v22_v23  }
  0x20   :  { %456 = vmatmul.mubr.msk.bf16.gmra.mxu0 %vm181_vm1, %v470_v20  ;;  %63 = vperm.xlu1 %464, %v23_v24  }
  0x21   :  { %285 = vmatprep.mubr.bf16.mxu0 %v501_v3 }
  0x23   :  { %377 = vperm.xlu0 %463, %v38_v26  }
  0x28   :  { %457 = vmatmul.mubr.msk.bf16.gmra.mxu0 %vm181_vm1, %v471_v25 }
  0x29   :  { %295 = vmatprep.mubr.bf16.mxu0 %v501_v3 }
  0x30   :  { %458 = vmatmul.mubr.msk.bf16.gmra.mxu0 %vm181_vm1, %v472_v27 }
  0x31   :  { %305 = vmatprep.mubr.bf16.mxu0 %v501_v3 }
  0x38   :  { %459 = vmatmul.mubr.msk.bf16.gmra.mxu0 %vm181_vm1, %v473_v28 }
  0x39   :  { %315 = vmatprep.mubr.bf16.mxu0 %v501_v3 }
  0x40   :  { %460 = vmatmul.mubr.msk.bf16.gmra.mxu0 %vm181_vm1, %v474_v29 }
  0x7e   :  { %v630_v30 = vpop.permute.xlu0 %128 }
  0x7f   :  { %v632_v31 = vpop.permute.xlu1 %118 }
  0x82   :  { %v634_v32 = vpop.permute.xlu0 %133 }
  0x83   :  { %v636_v33 = vpop.permute.xlu1 %123 }
  0x86   :  { %v638_v34 = vpop.permute.xlu0 %108 }
  0x87   :  { %v640_v35 = vpop.permute.xlu1 %113 }
  0x8a   :  { %v642_v36 = vpop.permute.xlu0 %98 }
  0x8b   :  { %v644_v37 = vpop.permute.xlu1 %103 }
  0x8e   :  { %v646_v38 = vpop.permute.xlu0 %88 }
  0x8f   :  { %v648_v39 = vpop.permute.xlu1 %93 }
  0x92   :  { %v650_v40 = vpop.permute.xlu0 %78 }
  0x93   :  { %v652_v41 = vpop.permute.xlu1 %83 }
  0x96   :  { %v69_v42 = vpop.permute.xlu0 %68 }
  0x97   :  { %v74_v43 = vpop.permute.xlu1 %73 }
  0x9a   :  { %v59_v45 = vpop.permute.xlu0 %58 }
  0x9b   :  { %v64_v47 = vpop.permute.xlu1 %63 }
  0xc8   :  { %v247_v44 = vpop.f32.mrf.mxu0 }
  0xc9   :  { %v248_v48 = vadd.f32 %v247_v44, %v59_v45 }
  0xca   :  { %v249_v46 = vpop.f32.mrf.mxu0 }
  0xcb   :  { %v250_v50 = vadd.f32 %v249_v46, %v59_v45  ;;  %v326_v53 = vmax.f32 %v248_v48, 0.0 }
  0xcc   :  { %v251_v49 = vpop.f32.mrf.mxu0 }
  0xcd   :  { %v252_v51 = vadd.f32 %v251_v49, %v64_v47  ;;  %v327_v57 = vmax.f32 %v250_v50, 0.0 }
  0xce   :  { %v253_v52 = vpop.f32.mrf.mxu0 }
  0xcf   :  { %v328_v54 = vmax.f32 %v252_v51, 0.0  ;;  %v254_v55 = vadd.f32 %v253_v52, %v64_v47 }
  0xd0   :  { %v257_v56 = vpop.f32.mrf.mxu0 }
  0xd1   :  { %v654_v58 = vpack.c.bf16 %v328_v54, %v326_v53  ;;  %v329_v59 = vmax.f32 %v254_v55, 0.0  ;;  %v258_v62 = vadd.f32 %v257_v56, %v69_v42 }
  0xd2   :  { %v259_v60 = vpop.f32.mrf.mxu0 }
  0xd3   :  { %v656_v61 = vpack.c.bf16 %v329_v59, %v327_v57  ;;  %v260_v0 = vadd.f32 %v259_v60, %v69_v42  ;;  %v330_v3 = vmax.f32 %v258_v62, 0.0 }
  0xd4   :  { %v261_v63 = vpop.f32.mrf.mxu0 }
  0xd5   :  { %v262_v1 = vadd.f32 %v261_v63, %v74_v43  ;;  %v331_v7 = vmax.f32 %v260_v0, 0.0 }
  0xd6   :  { %v263_v2 = vpop.f32.mrf.mxu0 }
  0xd7   :  { %v332_v4 = vmax.f32 %v262_v1, 0.0  ;;  %v264_v5 = vadd.f32 %v263_v2, %v74_v43 }
  0xd8   :  { %v658_v6 = vpop.f32.mrf.mxu0 }
  0xd9   :  { %v660_v8 = vpack.c.bf16 %v332_v4, %v330_v3  ;;  %v333_v9 = vmax.f32 %v264_v5, 0.0 }
  0xda   :  { %v662_v10 = vpop.f32.mrf.mxu0 }
  0xdb   :  { %v664_v11 = vpack.c.bf16 %v333_v9, %v331_v7 }
  0xdc   :  { %v666_v12 = vpop.f32.mrf.mxu0 }
  0xde   :  { %v668_v13 = vpop.f32.mrf.mxu0 }
  0xe0   :  { %v670_v14 = vpop.f32.mrf.mxu0 }
  0xe2   :  { %v279_v15 = vpop.f32.mrf.mxu0 }
  0xe4   :  { %v281_v16 = vpop.f32.mrf.mxu0 }
  0xe6   :  { %v283_v17 = vpop.f32.mrf.mxu0 }
  0xe8   :  { %v287_v18 = vpop.f32.mrf.mxu0 }
  0xea   :  { %v289_v19 = vpop.f32.mrf.mxu0 }
  0xec   :  { %v291_v20 = vpop.f32.mrf.mxu0 }
  0xed   :  { %v292_v9 = vadd.f32 %v291_v20, %v644_v37 }
  0xee   :  { %v293_v21 = vpop.f32.mrf.mxu0 }
  0xf0   :  { %v297_v22 = vpop.f32.mrf.mxu0 }
  0xf1   :  { %v298_v4 = vadd.f32 %v297_v22, %v638_v34 }
  0xf2   :  { %v299_v23 = vpop.f32.mrf.mxu0 }
  0xf3   :  { %v300_v62 = vadd.f32 %v299_v23, %v638_v34  ;;  %v280_v34 = vadd.f32 %v279_v15, %v646_v38 }
  0xf4   :  { %v301_v24 = vpop.f32.mrf.mxu0 }
  0xf5   :  { %v302_v0 = vadd.f32 %v301_v24, %v640_v35  ;;  %v347_v7 = vmax.f32 %v300_v62, 0.0  ;;  %v339_v15 = vmax.f32 %v280_v34, 0.0 }
  0xf6   :  { %v303_v25 = vpop.f32.mrf.mxu0 }
  0xf7   :  { %v304_v54 = vadd.f32 %v303_v25, %v640_v35  ;;  %v348_v23 = vmax.f32 %v302_v0, 0.0  ;;  %v284_v35 = vadd.f32 %v283_v17, %v648_v39  ;;  %v278_v17 = vadd.f32 %v670_v14, %v646_v38 }
  0xf8   :  { %v307_v26 = vpop.f32.mrf.mxu0 }
  0xf9   :  { %v308_v59 = vadd.f32 %v307_v26, %v632_v31  ;;  %v341_v20 = vmax.f32 %v284_v35, 0.0 }
  0xfa   :  { %v309_v27 = vpop.f32.mrf.mxu0 }
  0xfb   :  { %v310_v50 = vadd.f32 %v309_v27, %v632_v31  ;;  %v350_v5 = vmax.f32 %v308_v59, 0.0  ;;  %v290_v31 = vadd.f32 %v289_v19, %v642_v36  ;;  %v346_v27 = vmax.f32 %v298_v4, 0.0 }
  0xfc   :  { %v311_v28 = vpop.f32.mrf.mxu0  ;;  %v282_v19 = vadd.f32 %v281_v16, %v648_v39  ;;  %v272_v39 = vadd.f32 %v666_v12, %v652_v41 }
  0xfd   :  { %v312_v52 = vadd.f32 %v311_v28, %v636_v33  ;;  %v351_v63 = vmax.f32 %v310_v50, 0.0  ;;  %v343_v22 = vmax.f32 %v290_v31, 0.0  ;;  %v344_v28 = vmax.f32 %v292_v9, 0.0 }
  0xfe   :  { %v313_v29 = vpop.f32.mrf.mxu0  ;;  %v340_v16 = vmax.f32 %v282_v19, 0.0  ;;  %v336_v14 = vmax.f32 %v272_v39, 0.0 }
  0xff   :  { %v314_v45 = vadd.f32 %v313_v29, %v636_v33  ;;  %v352_v1 = vmax.f32 %v312_v52, 0.0  ;;  %v349_v33 = vmax.f32 %v304_v54, 0.0  ;;  %v368_v29 = vpack.c.bf16 %v348_v23, %v346_v27 }
 0x100   :  { %v317_v42 = vpop.f32.mrf.mxu0 }
 0x101   :  { %v318_v48 = vadd.f32 %v317_v42, %v630_v30  ;;  %v353_v55 = vmax.f32 %v314_v45, 0.0  ;;  %v370_v25 = vpack.c.bf16 %v352_v1, %v350_v5  ;;  %v369_v26 = vpack.c.bf16 %v349_v33, %v347_v7 }
 0x102   :  { %v319_v43 = vpop.f32.mrf.mxu0  ;;  %v365_v45 = vpack.c.bf16 %v341_v20, %v339_v15 }
 0x103   :  { %v320_v46 = vadd.f32 %v319_v43, %v630_v30  ;;  %v354_v60 = vmax.f32 %v318_v48, 0.0  ;;  %v371_v3 = vpack.c.bf16 %v353_v55, %v351_v63 }
 0x104   :  { %v321_v44 = vpop.f32.mrf.mxu0 }
 0x105   :  { %v322_v47 = vadd.f32 %v321_v44, %v634_v32  ;;  %v355_v56 = vmax.f32 %v320_v46, 0.0  ;;  %v338_v46 = vmax.f32 %v278_v17, 0.0 }
 0x106   :  { %v323_v49 = vpop.f32.mrf.mxu0 }
 0x107   :  { %v324_v51 = vadd.f32 %v323_v49, %v634_v32  ;;  %v356_v53 = vmax.f32 %v322_v47, 0.0  ;;  %v294_v32 = vadd.f32 %v293_v21, %v644_v37  ;;  %v288_v21 = vadd.f32 %v287_v18, %v642_v36 }
 0x108   :  { %v274_v37 = vadd.f32 %v668_v13, %v652_v41  ;;  %v270_v36 = vadd.f32 %v662_v10, %v650_v40  ;;  %v268_v13 = vadd.f32 %v658_v6, %v650_v40  ;;  %v364_v47 = vpack.c.bf16 %v340_v16, %v338_v46  ;;  %v374_v40 = vld [vmem:[%s714_s3] sm:$0x3]  ;;  %v378_v41 = vpop.permute.xlu0 %377 }
 0x109   :  { %v357_v57 = vmax.f32 %v324_v51, 0.0  ;;  %v372_v2 = vpack.c.bf16 %v356_v53, %v354_v60  ;;  %v345_v24 = vmax.f32 %v294_v32, 0.0  ;;  %v342_v43 = vmax.f32 %v288_v21, 0.0 }
 0x10a   :  { %v337_v44 = vmax.f32 %v274_v37, 0.0  ;;  %v335_v38 = vmax.f32 %v270_v36, 0.0  ;;  %v334_v10 = vmax.f32 %v268_v13, 0.0 }
 0x10b   :  { %v373_v30 = vpack.c.bf16 %v357_v57, %v355_v56  ;;  %v367_v42 = vpack.c.bf16 %v345_v24, %v343_v22  ;;  %v366_v18 = vpack.c.bf16 %v344_v28, %v342_v43 }
 0x10c   :  { %v363_v48 = vpack.c.bf16 %v337_v44, %v335_v38  ;;  %v362_v49 = vpack.c.bf16 %v336_v14, %v334_v10 }
 0x10d   :  { %380 = vmatprep.subr.bf16.mxu1 %v373_v30 }
 0x10e   :  { %381 = vmatpush1.bf16.msra.mxu1 %v372_v2 }
 0x10f   :  { %382 = vmatprep.subr.bf16.mxu1 %v371_v3 }
 0x112   :  { %383 = vmatpush1.bf16.msra.mxu1 %v370_v25 }
 0x113   :  { %384 = vmatprep.subr.bf16.mxu1 %v369_v26 }
 0x116   :  { %385 = vmatpush1.bf16.msra.mxu1 %v368_v29 }
 0x117   :  { %386 = vmatprep.subr.bf16.mxu1 %v367_v42 }
 0x11a   :  { %387 = vmatpush1.bf16.msra.mxu1 %v366_v18 }
 0x11b   :  { %388 = vmatprep.subr.bf16.mxu1 %v365_v45 }
 0x11e   :  { %389 = vmatpush1.bf16.msra.mxu1 %v364_v47 }
 0x11f   :  { %390 = vmatprep.subr.bf16.mxu1 %v363_v48 }
 0x122   :  { %391 = vmatpush1.bf16.msra.mxu1 %v362_v49 }
 0x123   :  { %392 = vmatprep.subr.bf16.mxu1 %v664_v11 }
 0x126   :  { %393 = vmatpush1.bf16.msra.mxu1 %v660_v8 }
 0x127   :  { %394 = vmatprep.subr.bf16.mxu1 %v656_v61 }
 0x12a   :  { %395 = vmatpush1.bf16.msra.mxu1 %v654_v58 }
 0x12d   :  { %413 = vmatmul.mubr.bf16.vlgmr.msra.gmra.mxu1 %v374_v40 }
 0x1ed   :  { %v414_v6 = vpop.f32.mrf.mxu1 }
 0x1ee   :  { %v415_v12 = vadd.f32 %v414_v6, %v378_v41 }
 0x1ef   :  { %v416_v50 = vpop.f32.mrf.mxu1 }
 0x1f0   :  { %v417_v51 = vadd.f32 %v416_v50, %v378_v41  ;;  %475 = vtanh.f32 %v415_v12 }
 0x1f1   :  { %v418_v52 = vpop.f32.mrf.mxu1 }
 0x1f2   :  { %477 = vtanh.f32 %v417_v51 }
 0x1f3   :  { %v419_v11 = vpop.f32.mrf.mxu1 }
 0x1fd   :  { %v476_v8 = vpop.eup %475 }
 0x1ff   :  { %v478_v61 = vpop.eup %477 }
 0x200   :  { %v425_v53 = vcombine.low %v476_v8, %v478_v61 }
 0x202   :  { %427 = vst [vmem:[#allocation2] sm:$0xff] %v425_v53 }
 0x203   :  { %490 = shalt.err (!%p487_p4)
}
 0x204   :  { %437 = dma.vmem_to_hbm [thread:$0]  %s435_s18, 128, %s716_s5, [#allocation3]  }
 0x205   :  { %499 = dma.done.wait [#allocation3], 128  }
 0x206   :  { %500 = vsyncadd [#allocation3], 4294967168 }
 0x207   :  { %441 = vsyncpa [#allocation3], 1 }

</bundles_post_ra>
